<compile_context>
chip_gen: v6e
topology: v6e:2x2x1
jax: 0.10.0
libtpu: 0.0.40
codegen_flags: <defaults>
</compile_context>

<pallas_src>
import functools
import math

import jax
import jax.numpy as jnp
import numpy as np
from jax import lax
from jax.experimental import pallas as pl
from jax.experimental.pallas import tpu as pltpu

DELTA = 0.5
EPSILON = 0.1
MARGIN = 0.5


def _composite_loss_kernel(all_s_ref, out_ref, *, n, scale, m, pairs, triples):
    """Fused CompositeLoss forward.

    all_s_ref : (V, V, n, n) f32 VMEM - all pairwise similarity matrices
    out_ref   : (1, 1)       f32 SMEM - final scalar loss
    """
    p1, p2 = len(pairs), len(triples)
    T = p1 + p2

    # ---- Assemble the term stack from static ref views (no wrapper gathers) ----
    S_pair = jnp.stack([all_s_ref[i, j] for (i, j) in pairs])       # (P1, n, n)
    S_triL = jnp.stack([all_s_ref[i, k] for (i, j, k) in triples])  # (P2, n, n)
    S_triR = jnp.stack([all_s_ref[k, j] for (i, j, k) in triples])  # (P2, n, n)

    # Triplewise S12[t] = all_S[i][k] @ all_S[k][j]  (one batched MXU matmul).
    S_tri = lax.dot_general(
        S_triL, S_triR,
        dimension_numbers=(((2,), (1,)), ((0,), (0,))),
        preferred_element_type=jnp.float32,
    )                                                               # (P2, n, n)

    # One merged batch for every downstream stage.
    S = jnp.concatenate([S_pair, S_tri], axis=0)                    # (T, n, n)
    x = S * scale

    # Row softmax (over the lane axis)  -> S12_hat.
    r = x - jnp.max(x, axis=-1, keepdims=True)
    er = jnp.exp(r)
    S12_hat = er * pl.reciprocal(jnp.sum(er, axis=-1, keepdims=True), approx=False)

    # Column softmax of S12 == row softmax of S12.T, transpose never materialized.
    c = x - jnp.max(x, axis=-2, keepdims=True)
    ec = jnp.exp(c)
    C = ec * pl.reciprocal(jnp.sum(ec, axis=-2, keepdims=True), approx=False)

    # A[t] = S12_hat[t] @ S21_hat[t] = S12_hat[t] @ C[t].T ; the transpose is
    # absorbed into the contraction (trans_b form).  Note: the hinge below is
    # invariant under A -> A.T, so swapping operands is valid if ever needed.
    A = lax.dot_general(
        S12_hat, C,
        dimension_numbers=(((2,), (2,)), ((0,), (0,))),
        preferred_element_type=jnp.float32,
    )                                                               # (T, n, n)

    row = lax.broadcasted_iota(jnp.int32, (n, n), 0)
    col = lax.broadcasted_iota(jnp.int32, (n, n), 1)
    eye = row == col

    # neg == A * (1 - I) exactly (diag zeroed, matching torch; A >= 0 so the
    # zeroed diagonal never wins the max).
    neg = jnp.where(eye, 0.0, A)
    diag = jnp.sum(jnp.where(eye, A, 0.0), axis=-1)                 # (T, n), once
    max_r = jnp.max(neg, axis=-1)                                   # (T, n)
    max_c = jnp.max(neg, axis=-2)                                   # (T, n)

    hinge = (jnp.maximum(max_r + m - diag, 0.0)
             + jnp.maximum(max_c + m - diag, 0.0))                  # (T, n)

    # Per-family normalization: first P1 terms get 1/(2n*P1), rest 1/(2n*P2).
    t_idx = lax.broadcasted_iota(jnp.int32, (T, 1), 0)
    w = jnp.where(t_idx < p1, 1.0 / (2.0 * n * p1), 1.0 / (2.0 * n * p2))

    out_ref[0, 0] = jnp.sum(hinge * w)


def composite_loss(all_S):
    """CompositeLoss(['pairwise_mvmhat', 'triplewise_mvmhat']).forward(all_S).

    all_S: (V, V, N, N) f32 similarity matrices (all views have N detections).
    """
    V, V2, n, n2 = all_S.shape
    assert V == V2 and n == n2
    assert V >= 3, "triplewise_mvmhat requires at least 3 views"

    pairs = tuple((i, j) for i in range(V) for j in range(i + 1, V))
    triples = tuple((i, j, k)
                    for i in range(V) for j in range(V) if i < j
                    for k in range(V) if k != i and k != j)

    scale = float(math.log(DELTA / (1.0 - DELTA) * n) / EPSILON)

    kernel = functools.partial(
        _composite_loss_kernel, n=n, scale=scale, m=MARGIN,
        pairs=pairs, triples=triples)

    out = pl.pallas_call(
        kernel,
        out_shape=jax.ShapeDtypeStruct((1, 1), jnp.float32),
        grid=(1,),  # single grid step: whole term stack processed at once
        in_specs=[
            pl.BlockSpec((V, V, n, n), lambda i: (0, 0, 0, 0)),  # one DMA of all_S
        ],
        out_specs=pl.BlockSpec((1, 1), lambda i: (0, 0),
                               memory_space=pltpu.MemorySpace.SMEM),
        compiler_params=pltpu.CompilerParams(
            dimension_semantics=("arbitrary",)),
    )(all_S)

    return out[0, 0]


# ---------------------------------------------------------------------------
# Pure-JAX reference (mirrors the PyTorch code) for self-validation.
# ---------------------------------------------------------------------------
def _ref_orig_cycle_loss(A, m=MARGIN):
    n = A.shape[0]
    I = jnp.eye(n, dtype=A.dtype)
    neg = A * (1 - I)
    diag = jnp.diag(A * I)
    loss = jnp.sum(jax.nn.relu(jnp.max(neg, axis=1) + m - diag))
    loss += jnp.sum(jax.nn.relu(jnp.max(neg, axis=0) + m - diag))
    return loss / (2 * n)


def _ref_term(S12):
    scale = math.log(DELTA / (1 - DELTA) * S12.shape[1]) / EPSILON
    S21 = S12.T
    S12_hat = jax.nn.softmax(S12 * scale, axis=1)
    S21_hat = jax.nn.softmax(S21 * scale, axis=1)
    return _ref_orig_cycle_loss(S12_hat @ S21_hat)


def _ref_composite_loss(all_S):
    V, _, n, _ = all_S.shape
    pair_terms, triple_terms = [], []
    for i in range(V):
        for j in range(V):
            if i < j:
                pair_terms.append(_ref_term(all_S[i, j]))
                for k in range(V):
                    if k != i and k != j:
                        triple_terms.append(_ref_term(all_S[i, k] @ all_S[k, j]))
    return (sum(pair_terms) / len(pair_terms)
            + sum(triple_terms) / len(triple_terms))


if __name__ == "__main__":
    V, N = 3, 16  # 3 camera views, 16 detections per view
    key = jax.random.PRNGKey(0)
    # all_S[i][j]: similarity matrix between detections of view i and view j.
    all_S = jax.random.normal(key, (V, V, N, N), dtype=jnp.float32)

    loss = jax.jit(composite_loss)(all_S)
    loss = jax.block_until_ready(loss)

    ref = _ref_composite_loss(all_S)
    assert np.isfinite(float(loss)), "non-finite loss"
    np.testing.assert_allclose(np.asarray(loss), np.asarray(ref), rtol=1e-5, atol=1e-5)

    print("KERNEL_OK")
</pallas_src>

<mosaic_0001>
module attributes {stable_mosaic.version = 11 : i64} {
  func.func @_composite_loss_kernel(%arg0: i32, %arg1: memref<3x3x16x16xf32, #tpu.memory_space<vmem>>, %arg2: memref<1x1xf32, #tpu.memory_space<smem>>) attributes {dimension_semantics = [#tpu.dimension_semantics<arbitrary>], iteration_bounds = array<i64: 1>, scalar_prefetch = 0 : i64, scratch_operands = 0 : i64, tpu.core_type = #tpu.core_type<tc>, window_params = [{pipeline_mode = #tpu.pipeline_mode<synchronous>, transform_indices = @transform_0, window_bounds = array<i64: 3, 3, 16, 16>}, {transform_indices = @transform_1, window_bounds = array<i64: 1, 1>}]} {
    %c0 = arith.constant 0 : index
    %c1 = arith.constant 1 : index
    %c0_0 = arith.constant 0 : index
    %c0_1 = arith.constant 0 : index
    %0 = vector.load %arg1[%c0, %c1, %c0_0, %c0_1] : memref<3x3x16x16xf32, #tpu.memory_space<vmem>>, vector<1x1x16x16xf32>
    %1 = vector.shape_cast %0 : vector<1x1x16x16xf32> to vector<16x16xf32>
    %c0_2 = arith.constant 0 : index
    %c2 = arith.constant 2 : index
    %c0_3 = arith.constant 0 : index
    %c0_4 = arith.constant 0 : index
    %2 = vector.load %arg1[%c0_2, %c2, %c0_3, %c0_4] : memref<3x3x16x16xf32, #tpu.memory_space<vmem>>, vector<1x1x16x16xf32>
    %3 = vector.shape_cast %2 : vector<1x1x16x16xf32> to vector<16x16xf32>
    %c1_5 = arith.constant 1 : index
    %c2_6 = arith.constant 2 : index
    %c0_7 = arith.constant 0 : index
    %c0_8 = arith.constant 0 : index
    %4 = vector.load %arg1[%c1_5, %c2_6, %c0_7, %c0_8] : memref<3x3x16x16xf32, #tpu.memory_space<vmem>>, vector<1x1x16x16xf32>
    %5 = vector.shape_cast %4 : vector<1x1x16x16xf32> to vector<16x16xf32>
    %6 = vector.shape_cast %1 : vector<16x16xf32> to vector<1x16x16xf32>
    %7 = vector.shape_cast %3 : vector<16x16xf32> to vector<1x16x16xf32>
    %8 = vector.shape_cast %5 : vector<16x16xf32> to vector<1x16x16xf32>
    %9 = tpu.concatenate %6, %7, %8 in 0 : vector<1x16x16xf32>, vector<1x16x16xf32>, vector<1x16x16xf32> -> vector<3x16x16xf32>
    %c0_9 = arith.constant 0 : index
    %c2_10 = arith.constant 2 : index
    %c0_11 = arith.constant 0 : index
    %c0_12 = arith.constant 0 : index
    %10 = vector.load %arg1[%c0_9, %c2_10, %c0_11, %c0_12] : memref<3x3x16x16xf32, #tpu.memory_space<vmem>>, vector<1x1x16x16xf32>
    %11 = vector.shape_cast %10 : vector<1x1x16x16xf32> to vector<16x16xf32>
    %c0_13 = arith.constant 0 : index
    %c1_14 = arith.constant 1 : index
    %c0_15 = arith.constant 0 : index
    %c0_16 = arith.constant 0 : index
    %12 = vector.load %arg1[%c0_13, %c1_14, %c0_15, %c0_16] : memref<3x3x16x16xf32, #tpu.memory_space<vmem>>, vector<1x1x16x16xf32>
    %13 = vector.shape_cast %12 : vector<1x1x16x16xf32> to vector<16x16xf32>
    %c1_17 = arith.constant 1 : index
    %c0_18 = arith.constant 0 : index
    %c0_19 = arith.constant 0 : index
    %c0_20 = arith.constant 0 : index
    %14 = vector.load %arg1[%c1_17, %c0_18, %c0_19, %c0_20] : memref<3x3x16x16xf32, #tpu.memory_space<vmem>>, vector<1x1x16x16xf32>
    %15 = vector.shape_cast %14 : vector<1x1x16x16xf32> to vector<16x16xf32>
    %16 = vector.shape_cast %11 : vector<16x16xf32> to vector<1x16x16xf32>
    %17 = vector.shape_cast %13 : vector<16x16xf32> to vector<1x16x16xf32>
    %18 = vector.shape_cast %15 : vector<16x16xf32> to vector<1x16x16xf32>
    %19 = tpu.concatenate %16, %17, %18 in 0 : vector<1x16x16xf32>, vector<1x16x16xf32>, vector<1x16x16xf32> -> vector<3x16x16xf32>
    %c2_21 = arith.constant 2 : index
    %c1_22 = arith.constant 1 : index
    %c0_23 = arith.constant 0 : index
    %c0_24 = arith.constant 0 : index
    %20 = vector.load %arg1[%c2_21, %c1_22, %c0_23, %c0_24] : memref<3x3x16x16xf32, #tpu.memory_space<vmem>>, vector<1x1x16x16xf32>
    %21 = vector.shape_cast %20 : vector<1x1x16x16xf32> to vector<16x16xf32>
    %c1_25 = arith.constant 1 : index
    %c2_26 = arith.constant 2 : index
    %c0_27 = arith.constant 0 : index
    %c0_28 = arith.constant 0 : index
    %22 = vector.load %arg1[%c1_25, %c2_26, %c0_27, %c0_28] : memref<3x3x16x16xf32, #tpu.memory_space<vmem>>, vector<1x1x16x16xf32>
    %23 = vector.shape_cast %22 : vector<1x1x16x16xf32> to vector<16x16xf32>
    %c0_29 = arith.constant 0 : index
    %c2_30 = arith.constant 2 : index
    %c0_31 = arith.constant 0 : index
    %c0_32 = arith.constant 0 : index
    %24 = vector.load %arg1[%c0_29, %c2_30, %c0_31, %c0_32] : memref<3x3x16x16xf32, #tpu.memory_space<vmem>>, vector<1x1x16x16xf32>
    %25 = vector.shape_cast %24 : vector<1x1x16x16xf32> to vector<16x16xf32>
    %26 = vector.shape_cast %21 : vector<16x16xf32> to vector<1x16x16xf32>
    %27 = vector.shape_cast %23 : vector<16x16xf32> to vector<1x16x16xf32>
    %28 = vector.shape_cast %25 : vector<16x16xf32> to vector<1x16x16xf32>
    %29 = tpu.concatenate %26, %27, %28 in 0 : vector<1x16x16xf32>, vector<1x16x16xf32>, vector<1x16x16xf32> -> vector<3x16x16xf32>
    %cst = arith.constant dense<0.000000e+00> : vector<3x16x16xf32>
    %30 = tpu.matmul %19, %29, %cst {dimension_numbers = #tpu.dot_dimension_numbers<[2], [1], [1], [2], [0, 0, 0, 1, 1, 2], [0], [0]>} : vector<3x16x16xf32>, vector<3x16x16xf32>, vector<3x16x16xf32> -> vector<3x16x16xf32>
    %31 = tpu.concatenate %9, %30 in 0 : vector<3x16x16xf32>, vector<3x16x16xf32> -> vector<6x16x16xf32>
    %cst_33 = arith.constant 27.7258873 : f32
    %32 = vector.broadcast %cst_33 : f32 to vector<6x16x16xf32>
    %33 = arith.mulf %31, %32 : vector<6x16x16xf32>
    %cst_34 = arith.constant dense<0xFF800000> : vector<6x16xf32>
    %34 = vector.multi_reduction <maximumf>, %33, %cst_34 [2] : vector<6x16x16xf32> to vector<6x16xf32>
    %35 = vector.shape_cast %34 : vector<6x16xf32> to vector<6x16x1xf32>
    %36 = vector.broadcast %35 : vector<6x16x1xf32> to vector<6x16x16xf32>
    %37 = arith.subf %33, %36 : vector<6x16x16xf32>
    %38 = math.exp %37 : vector<6x16x16xf32>
    %cst_35 = arith.constant dense<0.000000e+00> : vector<6x16xf32>
    %39 = vector.multi_reduction <add>, %38, %cst_35 [2] : vector<6x16x16xf32> to vector<6x16xf32>
    %40 = vector.shape_cast %39 : vector<6x16xf32> to vector<6x16x1xf32>
    %41 = tpu.reciprocal %40 : vector<6x16x1xf32> -> vector<6x16x1xf32>
    %42 = vector.broadcast %41 : vector<6x16x1xf32> to vector<6x16x16xf32>
    %43 = arith.mulf %38, %42 : vector<6x16x16xf32>
    %cst_36 = arith.constant dense<0xFF800000> : vector<6x16xf32>
    %44 = vector.multi_reduction <maximumf>, %33, %cst_36 [1] : vector<6x16x16xf32> to vector<6x16xf32>
    %45 = vector.shape_cast %44 : vector<6x16xf32> to vector<6x1x16xf32>
    %46 = vector.broadcast %45 : vector<6x1x16xf32> to vector<6x16x16xf32>
    %47 = arith.subf %33, %46 : vector<6x16x16xf32>
    %48 = math.exp %47 : vector<6x16x16xf32>
    %cst_37 = arith.constant dense<0.000000e+00> : vector<6x16xf32>
    %49 = vector.multi_reduction <add>, %48, %cst_37 [1] : vector<6x16x16xf32> to vector<6x16xf32>
    %50 = vector.shape_cast %49 : vector<6x16xf32> to vector<6x1x16xf32>
    %51 = tpu.reciprocal %50 : vector<6x1x16xf32> -> vector<6x1x16xf32>
    %52 = vector.broadcast %51 : vector<6x1x16xf32> to vector<6x16x16xf32>
    %53 = arith.mulf %48, %52 : vector<6x16x16xf32>
    %cst_38 = arith.constant dense<0.000000e+00> : vector<6x16x16xf32>
    %54 = tpu.matmul %43, %53, %cst_38 {dimension_numbers = #tpu.dot_dimension_numbers<[2], [2], [1], [1], [0, 0, 0, 1, 1, 1], [0], [0]>} : vector<6x16x16xf32>, vector<6x16x16xf32>, vector<6x16x16xf32> -> vector<6x16x16xf32>
    %55 = tpu.iota {dimensions = array<i32: 0>} : vector<16x16xi32>
    %56 = tpu.iota {dimensions = array<i32: 1>} : vector<16x16xi32>
    %57 = arith.cmpi eq, %55, %56 : vector<16x16xi32>
    %cst_39 = arith.constant 0.000000e+00 : f32
    %58 = vector.shape_cast %57 : vector<16x16xi1> to vector<1x16x16xi1>
    %59 = vector.broadcast %58 : vector<1x16x16xi1> to vector<6x16x16xi1>
    %60 = vector.broadcast %cst_39 : f32 to vector<6x16x16xf32>
    %61 = arith.select %59, %60, %54 : vector<6x16x16xi1>, vector<6x16x16xf32>
    %cst_40 = arith.constant 0.000000e+00 : f32
    %62 = vector.shape_cast %57 : vector<16x16xi1> to vector<1x16x16xi1>
    %63 = vector.broadcast %62 : vector<1x16x16xi1> to vector<6x16x16xi1>
    %64 = vector.broadcast %cst_40 : f32 to vector<6x16x16xf32>
    %65 = arith.select %63, %54, %64 : vector<6x16x16xi1>, vector<6x16x16xf32>
    %cst_41 = arith.constant dense<0.000000e+00> : vector<6x16xf32>
    %66 = vector.multi_reduction <add>, %65, %cst_41 [2] : vector<6x16x16xf32> to vector<6x16xf32>
    %cst_42 = arith.constant dense<0xFF800000> : vector<6x16xf32>
    %67 = vector.multi_reduction <maximumf>, %61, %cst_42 [2] : vector<6x16x16xf32> to vector<6x16xf32>
    %cst_43 = arith.constant dense<0xFF800000> : vector<6x16xf32>
    %68 = vector.multi_reduction <maximumf>, %61, %cst_43 [1] : vector<6x16x16xf32> to vector<6x16xf32>
    %cst_44 = arith.constant 5.000000e-01 : f32
    %69 = vector.broadcast %cst_44 : f32 to vector<6x16xf32>
    %70 = arith.addf %67, %69 : vector<6x16xf32>
    %71 = arith.subf %70, %66 : vector<6x16xf32>
    %cst_45 = arith.constant 0.000000e+00 : f32
    %72 = vector.broadcast %cst_45 : f32 to vector<6x16xf32>
    %73 = arith.maximumf %71, %72 : vector<6x16xf32>
    %cst_46 = arith.constant 5.000000e-01 : f32
    %74 = vector.broadcast %cst_46 : f32 to vector<6x16xf32>
    %75 = arith.addf %68, %74 : vector<6x16xf32>
    %76 = arith.subf %75, %66 : vector<6x16xf32>
    %cst_47 = arith.constant 0.000000e+00 : f32
    %77 = vector.broadcast %cst_47 : f32 to vector<6x16xf32>
    %78 = arith.maximumf %76, %77 : vector<6x16xf32>
    %79 = arith.addf %73, %78 : vector<6x16xf32>
    %80 = tpu.iota {dimensions = array<i32: 0>} : vector<6x1xi32>
    %c3_i32 = arith.constant 3 : i32
    %81 = vector.broadcast %c3_i32 : i32 to vector<6x1xi32>
    %82 = arith.cmpi slt, %80, %81 : vector<6x1xi32>
    %cst_48 = arith.constant 0.010416667 : f32
    %cst_49 = arith.constant 0.010416667 : f32
    %83 = vector.broadcast %cst_48 : f32 to vector<6x1xf32>
    %84 = vector.broadcast %cst_49 : f32 to vector<6x1xf32>
    %85 = arith.select %82, %83, %84 : vector<6x1xi1>, vector<6x1xf32>
    %86 = vector.broadcast %85 : vector<6x1xf32> to vector<6x16xf32>
    %87 = arith.mulf %79, %86 : vector<6x16xf32>
    %88 = vector.shape_cast %87 : vector<6x16xf32> to vector<1x6x16xf32>
    %cst_50 = arith.constant dense<0.000000e+00> : vector<1xf32>
    %89 = vector.multi_reduction <add>, %88, %cst_50 [1, 2] : vector<1x6x16xf32> to vector<1xf32>
    %90 = vector.shape_cast %89 : vector<1xf32> to vector<1x1x1xf32>
    %91 = vector.extract %90[0, 0, 0] : f32 from vector<1x1x1xf32>
    %c0_51 = arith.constant 0 : index
    %c0_52 = arith.constant 0 : index
    %92 = memref.load %arg2[%c0_51, %c0_52] : memref<1x1xf32, #tpu.memory_space<smem>>
    memref.store %91, %arg2[%c0_51, %c0_52] : memref<1x1xf32, #tpu.memory_space<smem>>
    return
  }
  func.func @transform_0(%arg0: i32) -> (i32, i32, i32, i32) {
    %c0_i32 = arith.constant 0 : i32
    %c0_i32_0 = arith.constant 0 : i32
    %c0_i32_1 = arith.constant 0 : i32
    %c0_i32_2 = arith.constant 0 : i32
    %c0_i32_3 = arith.constant 0 : i32
    return %c0_i32, %c0_i32_0, %c0_i32_1, %c0_i32_2 : i32, i32, i32, i32
  }
  func.func @transform_1(%arg0: i32) -> (i32, i32) {
    %c0_i32 = arith.constant 0 : i32
    %c0_i32_0 = arith.constant 0 : i32
    %c0_i32_1 = arith.constant 0 : i32
    return %c0_i32, %c0_i32_0 : i32, i32
  }
}

</mosaic_0001>

<bundles_post_ra>
// kernel: composite_loss.1
= control target key start
LH: loop header
LB: loop body
LE: loop exit
PB: predicated region body
PF: predicated region fallthrough
CT: control target
= control target key end

     0   :  { %6 = vsyncpa [#allocation3], 0  ;;  %s2376_s0 = inlined_call_operand.hbm [shape: f32[3,3,16,16], index: 0, kind: input, shape index: {}]   ;;  %s2377_s1 = inlined_call_operand.hbm [shape: f32[1,1], index: 1, kind: output, shape index: {}]  }
   0x1   :  { %7 = vsyncpa [#allocation4], 0  ;;  %s1877_s6 = smov [#allocation2]  }
   0x2   :  { %s13_s7 = sshll.u32 %s1877_s6, 4  ;;  %s14_s7 = int_to_ptr.vmem [resolvable:$true] %s13_s7 }
   0x3   :  { %s1853_s8 = scalar_lea.vmem %s14_s7, 2304  ;;  %p1858_p1 = scmp.lt.s32.totalorder %s14_s7, %s14_s7 }
   0x4   :  { %p1854_p0 = scmp.ne.s32.totalorder %s14_s7, %s1853_s8  ;;  %p1859_p2 = scmp.lt.s32.totalorder %s1853_s8, %s1853_s8 }
   0x6   :  { %p1860_p3 = por %p1859_p2, %p1858_p1 }
   0x8   :  { %p1861_p4 = pnand %p1860_p3, %p1854_p0 }
   0xa   :  { %1864 = shalt.err (!%p1861_p4)
}
   0xb   :  { %s1878_s9 = smov 128   ;;  %s1879_s10 = smov 8  }
   0xc   :  { %19 = dma.hbm_to_vmem [thread:$0]  %s2376_s0, 2304, %s14_s7, [#allocation3], %s1878_s9, %s1878_s9, %s1879_s10  }
   0xd   :  { %1873 = dma.done.wait [#allocation3], 2304  }
   0xe   :  { %1874 = vsyncadd [#allocation3], 4294964992  ;;  %v37_v0 = vld [vmem:[#allocation2 + $0x78] sm:$0xff]  ;;  %v36_v2 = vld [vmem:[#allocation2 + $0x70] sm:$0xff]  ;;  %vm38_vm0 = vcmask 130048   ;;  %vm1310_vm3 = vcmask 130112  }
   0xf   :  { %v31_v1 = vld [vmem:[#allocation2 + $0x58] sm:$0xff]  ;;  %1689 = vmatprep.subr.mxu0 %v37_v0  ;;  %v30_v4 = vld [vmem:[#allocation2 + $0x50] sm:$0xff]  ;;  %v27_v5 = vld [vmem:[#allocation2 + $0x20] sm:$0xff]  ;;  %vm1585_vm4 = vcmask 1041409   ;;  %vm1587_vm5 = vcmask 1042434   ;;  %vm1589_vm6 = vcmask 1043459  }
  0x10   :  { %1696 = vmatprep.subr.mxu1 %v31_v1  ;;  %v1895_v3 = vmul.f32 27.725887, %v31_v1  ;;  %v24_v6 = vld [vmem:[#allocation2 + $0x10] sm:$0xff]  ;;  %1690 = vmatpush3.msra.mxu0 %v37_v0  ;;  %v1897_v7 = vmul.f32 27.725887, %v30_v4  ;;  %v25_v9 = vld [vmem:[#allocation2 + $0x18] sm:$0xff] }
  0x11   :  { %1697 = vmatpush3.msra.mxu1 %v31_v1  ;;  %v1899_v8 = vmul.f32 27.725887, %v24_v6  ;;  %1691 = vmatprep.subr.mxu0 %v36_v2  ;;  %v28_v10 = vld [vmem:[#allocation2 + $0x28] sm:$0xff]  ;;  %v1901_v11 = vmul.f32 27.725887, %v25_v9  ;;  %v33_v13 = vld [vmem:[#allocation2 + $0x30] sm:$0xff] }
  0x12   :  { %1698 = vmatprep.subr.mxu1 %v30_v4  ;;  %v1903_v12 = vmul.f32 27.725887, %v27_v5  ;;  %1692 = vmatpush3.msra.mxu0 %v36_v2  ;;  %v309_v14 = vsel %vm38_vm0, %v1895_v3, -inf  ;;  %v306_v15 = vsel %vm38_vm0, %v1897_v7, -inf  ;;  %v1919_v21 = vmul.f32 27.725887, %v28_v10 }
  0x13   :  { %1693 = vmatprep.mubr.msk.f32.mxu0 %vm38_vm0, %v27_v5  ;;  %1699 = vmatpush3.msra.mxu1 %v30_v4  ;;  %v294_v16 = vsel %vm38_vm0, %v1899_v8, -inf  ;;  %v297_v17 = vsel %vm38_vm0, %v1901_v11, -inf  ;;  %v440_v18 = vmax.f32 %v306_v15, %v309_v14  ;;  %v34_v22 = vld [vmem:[#allocation2 + $0x38] sm:$0xff]  ;;  %vm1591_vm7 = vcmask 1044484   ;;  %s1881_s13 = smov [#allocation5]  }
  0x14   :  { %1700 = vmatprep.mubr.msk.f32.mxu1 %vm38_vm0, %v24_v6  ;;  %1694 = vmatmul.mubr.msk.f32.vlgmr.msra.gmra.mxu0 %vm38_vm0, %v28_v10  ;;  %v300_v19 = vsel %vm38_vm0, %v1903_v12, -inf  ;;  %v426_v20 = vmax.f32 %v294_v16, %v297_v17  ;;  %v303_v23 = vsel %vm38_vm0, %v1919_v21, -inf  ;;  %vm1593_vm8 = vcmask 1045509  }
  0x15   :  { %1701 = vmatmul.mubr.msk.f32.vlgmr.msra.gmra.mxu1 %vm38_vm0, %v25_v9  ;;  %1703 = vmatprep.subr.mxu0 %v28_v10  ;;  %v433_v24 = vmax.f32 %v300_v19, %v303_v23  ;;  %v441_v51 = vrot.slane %v440_v18, 4  ;;  %vm1596_vm9 = vcmask 128000  }
  0x16   :  { %1707 = vmatprep.mubr.msk.f32.mxu0 %vm38_vm0, %v33_v13  ;;  %1704 = vmatpush3.msra.mxu0 %v28_v10  ;;  %v427_v49 = vrot.slane %v426_v20, 4 }
  0x17   :  { %295 = vmax.xlane.f32.xlu0 %v294_v16  ;;  %1705 = vmatprep.subr.mxu0 %v27_v5  ;;  %v434_v25 = vrot.slane %v433_v24, 4  ;;  %v442_v53 = vmax.f32 %v440_v18, %v441_v51 }
  0x18   :  { %301 = vmax.xlane.f32.xlu1 %v300_v19  ;;  %1706 = vmatpush3.msra.mxu0 %v27_v5  ;;  %v428_v50 = vmax.f32 %v426_v20, %v427_v49 }
  0x19   :  { %1708 = vmatmul.mubr.msk.f32.vlgmr.msra.gmra.mxu0 %vm38_vm0, %v34_v22  ;;  %v435_v26 = vmax.f32 %v433_v24, %v434_v25  ;;  %v443_v55 = vrot.slane %v442_v53, 2 }
  0x1a   :  { %v429_v52 = vrot.slane %v428_v50, 2 }
  0x1b   :  { %298 = vmax.xlane.f32.xlu0 %v297_v17  ;;  %v436_v27 = vrot.slane %v435_v26, 2  ;;  %v444_v57 = vmax.f32 %v442_v53, %v443_v55 }
  0x1c   :  { %304 = vmax.xlane.f32.xlu1 %v303_v23  ;;  %v430_v54 = vmax.f32 %v428_v50, %v429_v52 }
  0x1d   :  { %v437_v28 = vmax.f32 %v435_v26, %v436_v27  ;;  %v445_v59 = vrot.slane %v444_v57, 1 }
  0x1e   :  { %v431_v56 = vrot.slane %v430_v54, 1 }
  0x1f   :  { %307 = vmax.xlane.f32.xlu0 %v306_v15  ;;  %v438_v29 = vrot.slane %v437_v28, 1  ;;  %v446_v62 = vmax.f32 %v444_v57, %v445_v59 }
  0x20   :  { %310 = vmax.xlane.f32.xlu1 %v309_v14  ;;  %v432_v58 = vmax.f32 %v430_v54, %v431_v56 }
  0x21   :  { %v439_v30 = vmax.f32 %v437_v28, %v438_v29  ;;  %v472_v4 = vsub.f32 %v1897_v7, %v446_v62  ;;  %v473_v5 = vsub.f32 %v1895_v3, %v446_v62 }
  0x22   :  { %v468_v60 = vsub.f32 %v1899_v8, %v432_v58  ;;  %v469_v61 = vsub.f32 %v1901_v11, %v432_v58 }
  0x23   :  { %v470_v31 = vsub.f32 %v1903_v12, %v439_v30  ;;  %v471_v32 = vsub.f32 %v1919_v21, %v439_v30  ;;  %v488_v9 = vmul.f32 1.442695, %v472_v4  ;;  %v490_v13 = vmul.f32 1.442695, %v473_v5 }
  0x24   :  { %v480_v0 = vmul.f32 1.442695, %v468_v60  ;;  %v482_v1 = vmul.f32 1.442695, %v469_v61 }
  0x25   :  { %v484_v33 = vmul.f32 1.442695, %v470_v31  ;;  %v486_v34 = vmul.f32 1.442695, %v471_v32 }
  0x27   :  { %1761 = vpow2.f32 %v484_v33 }
  0x28   :  { %1763 = vpow2.f32 %v486_v34 }
  0x34   :  { %v1762_v35 = vpop.eup %1761 }
  0x35   :  { %v1764_v36 = vpop.eup %1763  ;;  %v513_v37 = vsel %vm38_vm0, %v1762_v35, 0.0 }
  0x36   :  { %v514_v38 = vsel %vm38_vm0, %v1764_v36, 0.0 }
  0x37   :  { %v515_v39 = vadd.f32 %v514_v38, %v513_v37 }
  0x39   :  { %v516_v40 = vrot.slane %v515_v39, 4 }
  0x3b   :  { %v517_v41 = vadd.f32 %v516_v40, %v515_v39 }
  0x3d   :  { %v518_v42 = vrot.slane %v517_v41, 2 }
  0x3f   :  { %v519_v43 = vadd.f32 %v518_v42, %v517_v41 }
  0x41   :  { %v520_v44 = vrot.slane %v519_v43, 1 }
  0x43   :  { %v521_v45 = vadd.f32 %v520_v44, %v519_v43 }
  0x45   :  { %1765 = vrcp.f32 %v521_v45 }
  0x46   :  { %1767 = vpow2.f32 %v480_v0 }
  0x47   :  { %1769 = vpow2.f32 %v482_v1 }
  0x48   :  { %1771 = vpow2.f32 %v488_v9 }
  0x49   :  { %1773 = vpow2.f32 %v490_v13 }
  0x52   :  { %v1766_v46 = vpop.eup %1765 }
  0x53   :  { %v567_v47 = vmul.f32 %v1766_v46, %v1764_v36  ;;  %v566_v48 = vmul.f32 %v1766_v46, %v1762_v35  ;;  %v1942_v25 = vpop.eup %1767 }
  0x54   :  { %v1945_v26 = vpop.eup %1769  ;;  %v504_v30 = vsel %vm38_vm0, %v1942_v25, 0.0 }
  0x55   :  { %1717 = vmatprep.subr.msk.mxu0 %vm38_vm0, %v567_v47  ;;  %v1963_v37 = vpop.eup %1771 }
  0x56   :  { %1718 = vmatpush3.xpose.msk.msra.mxu0 %vm38_vm0, %v567_v47  ;;  %v1969_v42 = vpop.eup %1773  ;;  %v522_v51 = vsel %vm38_vm0, %v1963_v37, 0.0 }
  0x57   :  { %1719 = vmatprep.subr.msk.mxu0 %vm38_vm0, %v566_v48  ;;  %v523_v52 = vsel %vm38_vm0, %v1969_v42, 0.0 }
  0x58   :  { %v524_v57 = vadd.f32 %v523_v52, %v522_v51 }
  0x5a   :  { %1720 = vmatpush3.xpose.msk.msra.mxu0 %vm38_vm0, %v566_v48  ;;  %v525_v4 = vrot.slane %v524_v57, 4 }
  0xa0   :  { %v296_v63 = vpop.xlane.xlu0 %295 }
  0xa1   :  { %v302_v2 = vpop.xlane.xlu1 %301  ;;  %v330_v15 = vsub.f32 %v1899_v8, %v296_v63 }
  0xa2   :  { %v332_v22 = vsub.f32 %v1903_v12, %v302_v2 }
  0xa3   :  { %v342_v20 = vmul.f32 1.442695, %v330_v15 }
  0xa4   :  { %v299_v6 = vpop.xlane.xlu0 %298  ;;  %v346_v8 = vmul.f32 1.442695, %v332_v22 }
  0xa5   :  { %v305_v10 = vpop.xlane.xlu1 %304  ;;  %v331_v14 = vsub.f32 %v1901_v11, %v299_v6 }
  0xa6   :  { %v333_v17 = vsub.f32 %v1919_v21, %v305_v10 }
  0xa7   :  { %v344_v16 = vmul.f32 1.442695, %v331_v14 }
  0xa8   :  { %v308_v19 = vpop.xlane.xlu0 %307  ;;  %v348_v23 = vmul.f32 1.442695, %v333_v17 }
  0xa9   :  { %v311_v18 = vpop.xlane.xlu1 %310  ;;  %1775 = vpow2.f32 %v344_v16  ;;  %v334_v11 = vsub.f32 %v1897_v7, %v308_v19 }
  0xaa   :  { %v335_v24 = vsub.f32 %v1895_v3, %v311_v18  ;;  %1777 = vpow2.f32 %v342_v20  ;;  %v505_v3 = vsel %vm38_vm0, %v1945_v26, 0.0 }
  0xab   :  { %1779 = vpow2.f32 %v348_v23  ;;  %v350_v32 = vmul.f32 1.442695, %v334_v11  ;;  %v506_v38 = vadd.f32 %v505_v3, %v504_v30 }
  0xac   :  { %v352_v12 = vmul.f32 1.442695, %v335_v24  ;;  %1781 = vpow2.f32 %v346_v8 }
  0xad   :  { %v507_v50 = vrot.slane %v506_v38, 4 }
  0xae   :  { %1783 = vpow2.f32 %v352_v12 }
  0xaf   :  { %1785 = vpow2.f32 %v350_v32  ;;  %v508_v62 = vadd.f32 %v507_v50, %v506_v38 }
  0xb1   :  { %v509_v2 = vrot.slane %v508_v62, 2 }
  0xb3   :  { %v510_v14 = vadd.f32 %v509_v2, %v508_v62 }
  0xb5   :  { %v511_v18 = vrot.slane %v510_v14, 1 }
  0xb6   :  { %v1983_v53 = vpop.eup %1775 }
  0xb7   :  { %v1987_v59 = vpop.eup %1777  ;;  %v369_v61 = vsel %vm38_vm0, %v1983_v53, 0.0  ;;  %v512_v8 = vadd.f32 %v511_v18, %v510_v14 }
  0xb8   :  { %v1991_v63 = vpop.eup %1779  ;;  %v366_v10 = vsel %vm38_vm0, %v1987_v59, 0.0 }
  0xb9   :  { %v1993_v6 = vpop.eup %1781  ;;  %v375_v13 = vsel %vm38_vm0, %v1991_v63, 0.0  ;;  %1787 = vrcp.f32 %v512_v8 }
  0xba   :  { %v372_v23 = vsel %vm38_vm0, %v1993_v6, 0.0 }
  0xbb   :  { %v1999_v15 = vpop.eup %1783 }
  0xbc   :  { %v2001_v19 = vpop.eup %1785  ;;  %v381_v11 = vsel %vm38_vm0, %v1999_v15, 0.0 }
  0xbd   :  { %v378_v3 = vsel %vm38_vm0, %v2001_v19, 0.0 }
  0xd4   :  { %v1695_v27 = vpop.f32.mrf.mxu0 }
  0xd5   :  { %v1702_v28 = vpop.f32.mrf.mxu1  ;;  %v1947_v21 = vmul.f32 27.725887, %v1695_v27  ;;  %v526_v27 = vadd.f32 %v525_v4, %v524_v57 }
  0xd6   :  { %v1949_v29 = vmul.f32 27.725887, %v1702_v28  ;;  %v111_v31 = vpop.f32.mrf.mxu0 }
  0xd7   :  { %v192_v7 = vpop.f32.mrf.mxu1  ;;  %v1955_v33 = vmul.f32 27.725887, %v111_v31  ;;  %v315_v35 = vsel %vm38_vm0, %v1947_v21, -inf  ;;  %v527_v31 = vrot.slane %v526_v27, 2 }
  0xd8   :  { %v1957_v34 = vmul.f32 27.725887, %v192_v7  ;;  %v321_v36 = vsel %vm38_vm0, %v1949_v29, -inf  ;;  %316 = vmax.xlane.f32.xlu1 %v315_v35 }
  0xd9   :  { %v1709_v39 = vpop.f32.mrf.mxu0  ;;  %v312_v40 = vsel %vm38_vm0, %v1955_v33, -inf }
  0xda   :  { %v318_v41 = vsel %vm38_vm0, %v1957_v34, -inf  ;;  %v1971_v43 = vmul.f32 27.725887, %v1709_v39  ;;  %v447_v44 = vmax.f32 %v312_v40, %v315_v35  ;;  %313 = vmax.xlane.f32.xlu0 %v312_v40  ;;  %v528_v35 = vadd.f32 %v527_v31, %v526_v27 }
  0xdb   :  { %v1973_v45 = vmax.f32 %v318_v41, %v321_v36  ;;  %v273_v46 = vpop.f32.mrf.mxu0 }
  0xdc   :  { %v1975_v47 = vmul.f32 27.725887, %v273_v46  ;;  %v448_v48 = vrot.slane %v447_v44, 4  ;;  %322 = vmax.xlane.f32.xlu1 %v321_v36  ;;  %v327_v49 = vsel %vm38_vm0, %v1971_v43, -inf  ;;  %v529_v39 = vrot.slane %v528_v35, 1 }
  0xde   :  { %v449_v54 = vmax.f32 %v447_v44, %v448_v48  ;;  %319 = vmax.xlane.f32.xlu0 %v318_v41  ;;  %v324_v55 = vsel %vm38_vm0, %v1975_v47, -inf  ;;  %v530_v40 = vadd.f32 %v529_v39, %v528_v35  ;;  %v1788_v41 = vpop.eup %1787 }
  0xdf   :  { %v461_v56 = vmax.f32 %v324_v55, %v327_v49  ;;  %v565_v46 = vmul.f32 %v1788_v41, %v1945_v26  ;;  %v564_v51 = vmul.f32 %v1788_v41, %v1942_v25 }
  0xe0   :  { %v450_v58 = vrot.slane %v449_v54, 2  ;;  %328 = vmax.xlane.f32.xlu1 %v327_v49 }
  0xe1   :  { %v462_v60 = vrot.slane %v461_v56, 4  ;;  %1710 = vmatprep.subr.msk.mxu1 %vm38_vm0, %v565_v46 }
  0xe2   :  { %v451_v0 = vmax.f32 %v449_v54, %v450_v58  ;;  %325 = vmax.xlane.f32.xlu0 %v324_v55  ;;  %1711 = vmatpush3.xpose.msk.msra.mxu1 %vm38_vm0, %v565_v46 }
  0xe3   :  { %v463_v1 = vmax.f32 %v461_v56, %v462_v60  ;;  %1712 = vmatprep.subr.msk.mxu1 %vm38_vm0, %v564_v51 }
  0xe4   :  { %v452_v5 = vrot.slane %v451_v0, 1  ;;  %370 = vadd.xlane.f32.xlu1 %v369_v61 }
  0xe5   :  { %v464_v9 = vrot.slane %v463_v1, 2 }
  0xe6   :  { %v453_v16 = vmax.f32 %v451_v0, %v452_v5  ;;  %367 = vadd.xlane.f32.xlu0 %v366_v10  ;;  %1713 = vmatpush3.xpose.msk.msra.mxu1 %vm38_vm0, %v564_v51 }
  0xe7   :  { %v465_v17 = vmax.f32 %v463_v1, %v464_v9 }
  0xe8   :  { %v474_v20 = vsub.f32 %v1955_v33, %v453_v16  ;;  %v475_v22 = vsub.f32 %v1947_v21, %v453_v16  ;;  %376 = vadd.xlane.f32.xlu1 %v375_v13 }
  0xe9   :  { %v466_v24 = vrot.slane %v465_v17, 1 }
  0xea   :  { %v492_v28 = vmul.f32 1.442695, %v474_v20  ;;  %v494_v12 = vmul.f32 1.442695, %v475_v22  ;;  %373 = vadd.xlane.f32.xlu0 %v372_v23  ;;  %v455_v22 = vrot.slane %v1973_v45, 4 }
  0xeb   :  { %v467_v30 = vmax.f32 %v465_v17, %v466_v24 }
  0xec   :  { %1789 = vpow2.f32 %v492_v28  ;;  %382 = vadd.xlane.f32.xlu1 %v381_v11  ;;  %v456_v23 = vmax.f32 %v1973_v45, %v455_v22 }
  0xed   :  { %1791 = vpow2.f32 %v494_v12  ;;  %v478_v7 = vsub.f32 %v1975_v47, %v467_v30  ;;  %v479_v32 = vsub.f32 %v1971_v43, %v467_v30 }
  0xee   :  { %379 = vadd.xlane.f32.xlu0 %v378_v3  ;;  %v457_v24 = vrot.slane %v456_v23, 2 }
  0xef   :  { %v500_v36 = vmul.f32 1.442695, %v478_v7  ;;  %v502_v38 = vmul.f32 1.442695, %v479_v32 }
  0xf0   :  { %v458_v11 = vmax.f32 %v456_v23, %v457_v24 }
  0xf1   :  { %1793 = vpow2.f32 %v500_v36 }
  0xf2   :  { %1795 = vpow2.f32 %v502_v38  ;;  %v459_v8 = vrot.slane %v458_v11, 1 }
  0xf3   :  { %1797 = vrcp.f32 %v530_v40 }
  0xf4   :  { %v460_v27 = vmax.f32 %v458_v11, %v459_v8 }
  0xf6   :  { %v476_v28 = vsub.f32 %v1957_v34, %v460_v27  ;;  %v477_v12 = vsub.f32 %v1949_v29, %v460_v27 }
  0xf8   :  { %v496_v30 = vmul.f32 1.442695, %v476_v28  ;;  %v498_v3 = vmul.f32 1.442695, %v477_v12 }
  0xf9   :  { %v1790_v44 = vpop.eup %1789 }
  0xfa   :  { %v1792_v48 = vpop.eup %1791  ;;  %v531_v49 = vsel %vm38_vm0, %v1790_v44, 0.0 }
  0xfb   :  { %v532_v50 = vsel %vm38_vm0, %v1792_v48, 0.0 }
  0xfc   :  { %v533_v52 = vadd.f32 %v532_v50, %v531_v49 }
  0xfe   :  { %v1794_v54 = vpop.eup %1793  ;;  %v534_v55 = vrot.slane %v533_v52, 4 }
  0xff   :  { %v2020_v56 = vpop.eup %1795  ;;  %v549_v26 = vsel %vm38_vm0, %v1794_v54, 0.0 }
 0x100   :  { %v2023_v57 = vpop.eup %1797  ;;  %v550_v58 = vsel %vm38_vm0, %v2020_v56, 0.0  ;;  %v535_v60 = vadd.f32 %v534_v55, %v533_v52 }
 0x101   :  { %v551_v25 = vadd.f32 %v550_v58, %v549_v26  ;;  %v2030_v61 = vmul.f32 %v2023_v57, %v1969_v42 }
 0x102   :  { %v536_v62 = vrot.slane %v535_v60, 2 }
 0x103   :  { %v552_v0 = vrot.slane %v551_v25, 4  ;;  %1724 = vmatprep.subr.msk.mxu1 %vm38_vm0, %v2030_v61 }
 0x104   :  { %v537_v1 = vadd.f32 %v536_v62, %v535_v60 }
 0x105   :  { %v553_v2 = vadd.f32 %v552_v0, %v551_v25 }
 0x106   :  { %v538_v4 = vrot.slane %v537_v1, 1 }
 0x107   :  { %v554_v5 = vrot.slane %v553_v2, 2 }
 0x108   :  { %v539_v9 = vadd.f32 %v538_v4, %v537_v1 }
 0x109   :  { %v555_v10 = vadd.f32 %v554_v5, %v553_v2 }
 0x10a   :  { %1799 = vrcp.f32 %v539_v9 }
 0x10b   :  { %v556_v13 = vrot.slane %v555_v10, 1 }
 0x10d   :  { %v557_v14 = vadd.f32 %v556_v13, %v555_v10 }
 0x10f   :  { %1801 = vrcp.f32 %v557_v14 }
 0x110   :  { %1803 = vpow2.f32 %v496_v30 }
 0x111   :  { %1805 = vpow2.f32 %v498_v3 }
 0x117   :  { %v1800_v16 = vpop.eup %1799 }
 0x118   :  { %v2034_v17 = vmul.f32 %v1800_v16, %v1792_v48  ;;  %v2036_v42 = vmul.f32 %v1800_v16, %v1790_v44 }
 0x11a   :  { %1731 = vmatprep.subr.msk.mxu0 %vm38_vm0, %v2034_v17 }
 0x11c   :  { %v2040_v18 = vpop.eup %1801 }
 0x11d   :  { %v2043_v20 = vmul.f32 %v2040_v18, %v1794_v54  ;;  %v2049_v31 = vpop.eup %1803 }
 0x11e   :  { %v2051_v7 = vpop.eup %1805  ;;  %v540_v32 = vsel %vm38_vm0, %v2049_v31, 0.0 }
 0x11f   :  { %v541_v45 = vsel %vm38_vm0, %v2051_v7, 0.0 }
 0x120   :  { %v542_v35 = vadd.f32 %v541_v45, %v540_v32 }
 0x122   :  { %v543_v36 = vrot.slane %v542_v35, 4 }
 0x124   :  { %v544_v40 = vadd.f32 %v543_v36, %v542_v35  ;;  %v568_v35 = vmul.f32 %v2023_v57, %v1963_v37  ;;  %v575_v57 = vmul.f32 %v2040_v18, %v2020_v56 }
 0x126   :  { %v545_v51 = vrot.slane %v544_v40, 2 }
 0x128   :  { %v546_v60 = vadd.f32 %v545_v51, %v544_v40 }
 0x12a   :  { %v547_v1 = vrot.slane %v546_v60, 1 }
 0x12c   :  { %v548_v4 = vadd.f32 %v547_v1, %v546_v60 }
 0x161   :  { %v317_v38 = vpop.xlane.xlu1 %316 }
 0x162   :  { %v337_v39 = vsub.f32 %v1947_v21, %v317_v38 }
 0x163   :  { %v314_v41 = vpop.xlane.xlu0 %313 }
 0x164   :  { %v356_v44 = vmul.f32 1.442695, %v337_v39  ;;  %v336_v46 = vsub.f32 %v1955_v33, %v314_v41 }
 0x165   :  { %v323_v48 = vpop.xlane.xlu1 %322 }
 0x166   :  { %1807 = vpow2.f32 %v356_v44  ;;  %v354_v49 = vmul.f32 1.442695, %v336_v46  ;;  %v339_v50 = vsub.f32 %v1949_v29, %v323_v48 }
 0x167   :  { %v320_v52 = vpop.xlane.xlu0 %319 }
 0x168   :  { %1809 = vpow2.f32 %v354_v49  ;;  %v360_v54 = vmul.f32 1.442695, %v339_v50  ;;  %v338_v55 = vsub.f32 %v1957_v34, %v320_v52 }
 0x169   :  { %v329_v26 = vpop.xlane.xlu1 %328 }
 0x16a   :  { %1811 = vpow2.f32 %v360_v54  ;;  %v358_v58 = vmul.f32 1.442695, %v338_v55  ;;  %v341_v21 = vsub.f32 %v1971_v43, %v329_v26  ;;  %v1098_v26 = vlaneseq }
 0x16b   :  { %v326_v25 = vpop.xlane.xlu0 %325 }
 0x16c   :  { %1813 = vpow2.f32 %v358_v58  ;;  %v364_v33 = vmul.f32 1.442695, %v341_v21  ;;  %v340_v62 = vsub.f32 %v1975_v47, %v326_v25  ;;  %v2137_v58 = vshrl.u32 %v1098_v26, 7 }
 0x16d   :  { %v371_v0 = vpop.xlane.xlu1 %370  ;;  %v1102_v60 = vand.u32 127, %v1098_v26 }
 0x16e   :  { %1815 = vpow2.f32 %v364_v33  ;;  %v362_v29 = vmul.f32 1.442695, %v340_v62  ;;  %v1100_v21 = vadd.s32 8, %v2137_v58 }
 0x16f   :  { %1817 = vrcp.f32 %v371_v0  ;;  %v368_v2 = vpop.xlane.xlu0 %367  ;;  %vm2145_vm2 = vcmp.eq.s32.totalorder %v2137_v58, %v1102_v60 }
 0x170   :  { %1819 = vpow2.f32 %v362_v29  ;;  %vm2140_vm1 = vcmp.eq.s32.totalorder %v1100_v21, %v1102_v60 }
 0x171   :  { %1821 = vrcp.f32 %v368_v2  ;;  %v377_v34 = vpop.xlane.xlu1 %376 }
 0x172   :  { %1823 = vrcp.f32 %v377_v34 }
 0x173   :  { %v2063_v5 = vpop.eup %1807  ;;  %v374_v43 = vpop.xlane.xlu0 %373 }
 0x174   :  { %1825 = vrcp.f32 %v374_v43  ;;  %v387_v9 = vsel %vm38_vm0, %v2063_v5, 0.0 }
 0x175   :  { %v2067_v10 = vpop.eup %1809  ;;  %388 = vadd.xlane.f32.xlu1 %v387_v9  ;;  %v383_v47 = vpop.xlane.xlu1 %382  ;;  %1827 = vrcp.f32 %v548_v4 }
 0x176   :  { %v384_v13 = vsel %vm38_vm0, %v2067_v10, 0.0  ;;  %1829 = vrcp.f32 %v383_v47 }
 0x177   :  { %v2071_v14 = vpop.eup %1811  ;;  %385 = vadd.xlane.f32.xlu0 %v384_v13  ;;  %v380_v16 = vpop.xlane.xlu0 %379 }
 0x178   :  { %1831 = vrcp.f32 %v380_v16  ;;  %v393_v22 = vsel %vm38_vm0, %v2071_v14, 0.0 }
 0x179   :  { %v2075_v23 = vpop.eup %1813  ;;  %394 = vadd.xlane.f32.xlu1 %v393_v22 }
 0x17a   :  { %v390_v24 = vsel %vm38_vm0, %v2075_v23, 0.0 }
 0x17b   :  { %v2079_v11 = vpop.eup %1815  ;;  %391 = vadd.xlane.f32.xlu0 %v390_v24 }
 0x17c   :  { %v1818_v8 = vpop.eup %1817  ;;  %v399_v27 = vsel %vm38_vm0, %v2079_v11, 0.0 }
 0x17d   :  { %v2083_v28 = vpop.eup %1819  ;;  %400 = vadd.xlane.f32.xlu1 %v399_v27  ;;  %v415_v45 = vmul.f32 %v1818_v8, %v1983_v53 }
 0x17e   :  { %v1822_v12 = vpop.eup %1821  ;;  %v396_v30 = vsel %vm38_vm0, %v2083_v28, 0.0 }
 0x17f   :  { %397 = vadd.xlane.f32.xlu0 %v396_v30  ;;  %v414_v3 = vmul.f32 %v1822_v12, %v1987_v59  ;;  %v1824_v32 = vpop.eup %1823 }
 0x180   :  { %v417_v40 = vmul.f32 %v1824_v32, %v1991_v63 }
 0x181   :  { %v1826_v36 = vpop.eup %1825  ;;  %1714 = vmatprep.mubr.msk.f32.mxu1 %vm38_vm0, %v414_v3 }
 0x182   :  { %1715 = vmatmul.mubr.msk.f32.vlgmr.msra.gmra.mxu1 %vm38_vm0, %v415_v45  ;;  %v416_v38 = vmul.f32 %v1826_v36, %v1993_v6  ;;  %v1828_v39 = vpop.eup %1827 }
 0x183   :  { %1725 = vmatpush3.xpose.msk.msra.mxu1 %vm38_vm0, %v2030_v61  ;;  %v1830_v59 = vpop.eup %1829  ;;  %v573_v37 = vmul.f32 %v1828_v39, %v2051_v7 }
 0x184   :  { %1721 = vmatprep.mubr.msk.f32.mxu0 %vm38_vm0, %v416_v38  ;;  %1726 = vmatprep.subr.msk.mxu1 %vm38_vm0, %v568_v35  ;;  %v419_v63 = vmul.f32 %v1830_v59, %v1999_v15 }
 0x185   :  { %v1832_v53 = vpop.eup %1831  ;;  %1722 = vmatmul.mubr.msk.f32.vlgmr.msra.gmra.mxu0 %vm38_vm0, %v417_v40 }
 0x186   :  { %1732 = vmatpush3.xpose.msk.msra.mxu0 %vm38_vm0, %v2034_v17  ;;  %v418_v6 = vmul.f32 %v1832_v53, %v2001_v19  ;;  %v572_v19 = vmul.f32 %v1828_v39, %v2049_v31 }
 0x187   :  { %1727 = vmatpush3.xpose.msk.msra.mxu1 %vm38_vm0, %v568_v35  ;;  %1733 = vmatprep.subr.msk.mxu0 %vm38_vm0, %v2036_v42 }
 0x188   :  { %1738 = vmatprep.subr.msk.mxu1 %vm38_vm0, %v573_v37  ;;  %1728 = vmatprep.mubr.msk.f32.mxu1 %vm38_vm0, %v418_v6 }
 0x18a   :  { %1729 = vmatmul.mubr.msk.f32.vlgmr.msra.gmra.mxu1 %vm38_vm0, %v419_v63  ;;  %1734 = vmatpush3.xpose.msk.msra.mxu0 %vm38_vm0, %v2036_v42 }
 0x18b   :  { %1739 = vmatpush3.xpose.msk.msra.mxu1 %vm38_vm0, %v573_v37  ;;  %1745 = vmatprep.subr.msk.mxu0 %vm38_vm0, %v575_v57 }
 0x18c   :  { %1740 = vmatprep.subr.msk.mxu1 %vm38_vm0, %v572_v19 }
 0x18f   :  { %1741 = vmatpush3.xpose.msk.msra.mxu1 %vm38_vm0, %v572_v19 }
 0x1fe   :  { %v389_v61 = vpop.xlane.xlu1 %388 }
 0x1ff   :  { %1833 = vrcp.f32 %v389_v61  ;;  %v1305_v61 = vadd.s32 4294967288, %v1102_v60 }
 0x200   :  { %v386_v15 = vpop.xlane.xlu0 %385 }
 0x201   :  { %1835 = vrcp.f32 %v386_v15 }
 0x202   :  { %v395_v56 = vpop.xlane.xlu1 %394 }
 0x203   :  { %1837 = vrcp.f32 %v395_v56 }
 0x204   :  { %v392_v17 = vpop.xlane.xlu0 %391 }
 0x205   :  { %1839 = vrcp.f32 %v392_v17  ;;  %v2188_v17 = vsub.s32 %v1102_v60, %v2137_v58  ;;  %v2209_v60 = vsub.s32 0, %v2137_v58 }
 0x206   :  { %v401_v18 = vpop.xlane.xlu1 %400 }
 0x207   :  { %1841 = vrcp.f32 %v401_v18  ;;  %v2191_v18 = vsub.s32 %v1305_v61, %v2137_v58 }
 0x208   :  { %v398_v42 = vpop.xlane.xlu0 %397 }
 0x209   :  { %1843 = vrcp.f32 %v398_v42 }
 0x20c   :  { %v1834_v31 = vpop.eup %1833 }
 0x20d   :  { %v421_v44 = vmul.f32 %v1834_v31, %v2063_v5 }
 0x20e   :  { %v1836_v7 = vpop.eup %1835 }
 0x20f   :  { %v420_v41 = vmul.f32 %v1836_v7, %v2067_v10 }
 0x210   :  { %v1838_v46 = vpop.eup %1837 }
 0x211   :  { %1735 = vmatprep.mubr.msk.f32.mxu0 %vm38_vm0, %v420_v41  ;;  %v423_v50 = vmul.f32 %v1838_v46, %v2071_v14 }
 0x212   :  { %v1840_v48 = vpop.eup %1839  ;;  %1736 = vmatmul.mubr.msk.f32.vlgmr.msra.gmra.mxu0 %vm38_vm0, %v421_v44 }
 0x213   :  { %1746 = vmatpush3.xpose.msk.msra.mxu0 %vm38_vm0, %v575_v57  ;;  %v422_v49 = vmul.f32 %v1840_v48, %v2075_v23 }
 0x214   :  { %1747 = vmatprep.subr.msk.mxu0 %vm38_vm0, %v2043_v20  ;;  %v1842_v51 = vpop.eup %1841 }
 0x215   :  { %1742 = vmatprep.mubr.msk.f32.mxu1 %vm38_vm0, %v422_v49  ;;  %v425_v55 = vmul.f32 %v1842_v51, %v2079_v11 }
 0x216   :  { %v1844_v52 = vpop.eup %1843  ;;  %1743 = vmatmul.mubr.msk.f32.vlgmr.msra.gmra.mxu1 %vm38_vm0, %v423_v50 }
 0x217   :  { %1748 = vmatpush3.xpose.msk.msra.mxu0 %vm38_vm0, %v2043_v20  ;;  %v424_v54 = vmul.f32 %v1844_v52, %v2083_v28 }
 0x219   :  { %1749 = vmatprep.mubr.msk.f32.mxu0 %vm38_vm0, %v424_v54 }
 0x21a   :  { %1750 = vmatmul.mubr.msk.f32.vlgmr.msra.gmra.mxu0 %vm38_vm0, %v425_v55 }
 0x242   :  { %v1716_v33 = vpop.f32.mrf.mxu1 }
 0x243   :  { %v1122_v62 = vsel %vm2140_vm1, %v1716_v33, 0.0  ;;  %v1110_v0 = vsel %vm2140_vm1, 0.0, %v1716_v33 }
 0x244   :  { %v654_v29 = vpop.f32.mrf.mxu1  ;;  %v1136_v1 = vsel %vm38_vm0, %v1122_v62, 0.0  ;;  %v1172_v4 = vsel %vm38_vm0, %v1110_v0, -inf }
 0x245   :  { %1137 = vadd.xlane.f32.xlu1 %v1136_v1  ;;  %v1723_v2 = vpop.f32.mrf.mxu0  ;;  %v1121_v34 = vsel %vm2145_vm2, %v654_v29, 0.0  ;;  %v1109_v5 = vsel %vm2145_vm2, 0.0, %v654_v29 }
 0x246   :  { %v1133_v43 = vsel %vm38_vm0, %v1121_v34, 0.0  ;;  %v1124_v9 = vsel %vm2140_vm1, %v1723_v2, 0.0  ;;  %v1169_v10 = vsel %vm38_vm0, %v1109_v5, -inf  ;;  %v1112_v47 = vsel %vm2140_vm1, 0.0, %v1723_v2 }
 0x247   :  { %1134 = vadd.xlane.f32.xlu0 %v1133_v43  ;;  %v741_v13 = vpop.f32.mrf.mxu0  ;;  %v1142_v14 = vsel %vm38_vm0, %v1124_v9, 0.0  ;;  %v1205_v16 = vmax.f32 %v1169_v10, %v1172_v4  ;;  %v1178_v11 = vsel %vm38_vm0, %v1112_v47, -inf }
 0x248   :  { %v1123_v22 = vsel %vm2145_vm2, %v741_v13, 0.0  ;;  %v1111_v23 = vsel %vm2145_vm2, 0.0, %v741_v13 }
 0x249   :  { %1143 = vadd.xlane.f32.xlu1 %v1142_v14  ;;  %v1139_v24 = vsel %vm38_vm0, %v1123_v22, 0.0  ;;  %v1175_v8 = vsel %vm38_vm0, %v1111_v23, -inf  ;;  %v1206_v59 = vrot.slane %v1205_v16, 4 }
 0x24a   :  { %v1730_v27 = vpop.f32.mrf.mxu1  ;;  %v1212_v28 = vmax.f32 %v1175_v8, %v1178_v11 }
 0x24b   :  { %1140 = vadd.xlane.f32.xlu0 %v1139_v24  ;;  %v1114_v12 = vsel %vm2140_vm1, 0.0, %v1730_v27  ;;  %v1126_v36 = vsel %vm2140_vm1, %v1730_v27, 0.0  ;;  %v1207_v53 = vmax.f32 %v1205_v16, %v1206_v59 }
 0x24c   :  { %v828_v30 = vpop.f32.mrf.mxu1  ;;  %v1184_v32 = vsel %vm38_vm0, %v1114_v12, -inf  ;;  %v1148_v39 = vsel %vm38_vm0, %v1126_v36, 0.0  ;;  %v1213_v37 = vrot.slane %v1212_v28, 4 }
 0x24d   :  { %1173 = vmax.xlane.f32.xlu1 %v1172_v4  ;;  %v1113_v3 = vsel %vm2145_vm2, 0.0, %v828_v30  ;;  %v1125_v38 = vsel %vm2145_vm2, %v828_v30, 0.0  ;;  %v1208_v6 = vrot.slane %v1207_v53, 2 }
 0x24e   :  { %v1181_v45 = vsel %vm38_vm0, %v1113_v3, -inf  ;;  %v1145_v40 = vsel %vm38_vm0, %v1125_v38, 0.0  ;;  %v1214_v63 = vmax.f32 %v1212_v28, %v1213_v37 }
 0x24f   :  { %1170 = vmax.xlane.f32.xlu0 %v1169_v10  ;;  %v2179_v35 = vmax.f32 %v1181_v45, %v1184_v32  ;;  %v1209_v57 = vmax.f32 %v1207_v53, %v1208_v6 }
 0x250   :  { %v1215_v19 = vrot.slane %v1214_v63, 2 }
 0x251   :  { %1179 = vmax.xlane.f32.xlu1 %v1178_v11  ;;  %v1210_v15 = vrot.slane %v1209_v57, 1  ;;  %v1220_v37 = vrot.slane %v2179_v35, 4 }
 0x252   :  { %v1216_v56 = vmax.f32 %v1214_v63, %v1215_v19 }
 0x253   :  { %1176 = vmax.xlane.f32.xlu0 %v1175_v8  ;;  %v1211_v7 = vmax.f32 %v1209_v57, %v1210_v15  ;;  %v1221_v19 = vmax.f32 %v2179_v35, %v1220_v37 }
 0x254   :  { %v1217_v42 = vrot.slane %v1216_v56, 1 }
 0x255   :  { %1149 = vadd.xlane.f32.xlu1 %v1148_v39  ;;  %v1283_v50 = vadd.f32 0.5, %v1211_v7 }
 0x256   :  { %v1218_v51 = vmax.f32 %v1216_v56, %v1217_v42  ;;  %v1222_v42 = vrot.slane %v1221_v19, 2 }
 0x257   :  { %1146 = vadd.xlane.f32.xlu0 %v1145_v40 }
 0x258   :  { %v1284_v34 = vadd.f32 0.5, %v1218_v51 }
 0x259   :  { %1185 = vmax.xlane.f32.xlu1 %v1184_v32 }
 0x25b   :  { %1182 = vmax.xlane.f32.xlu0 %v1181_v45 }
 0x2ce   :  { %v2193_v31 = vpop.xlane.xlu1 %1137 }
 0x2cf   :  { %v1309_v44 = vrot.slane %v2193_v31, %v2191_v18 }
 0x2d0   :  { %v2195_v41 = vpop.xlane.xlu0 %1134 }
 0x2d1   :  { %v1304_v46 = vrot.slane %v2195_v41, %v2188_v17 }
 0x2d2   :  { %v2201_v48 = vpop.xlane.xlu1 %1143  ;;  %v1737_v49 = vpop.f32.mrf.mxu0 }
 0x2d3   :  { %v1311_v52 = vsel %vm1310_vm3, %v1309_v44, %v1304_v46  ;;  %v1116_v54 = vsel %vm2140_vm1, 0.0, %v1737_v49  ;;  %v1319_v33 = vrot.slane %v2201_v48, %v2191_v18  ;;  %v1128_v57 = vsel %vm2140_vm1, %v1737_v49, 0.0 }
 0x2d4   :  { %v2206_v55 = vpop.xlane.xlu0 %1140  ;;  %v915_v26 = vpop.f32.mrf.mxu0  ;;  %v1363_v21 = vsub.f32 %v1283_v50, %v1311_v52  ;;  %v1190_v5 = vsel %vm38_vm0, %v1116_v54, -inf  ;;  %v1154_v61 = vsel %vm38_vm0, %v1128_v57, 0.0  ;;  %v1223_v46 = vmax.f32 %v1221_v19, %v1222_v42 }
 0x2d5   :  { %v1315_v62 = vrot.slane %v2206_v55, %v2188_v17  ;;  %v1115_v0 = vsel %vm2145_vm2, 0.0, %v915_v26  ;;  %v1127_v40 = vsel %vm2145_vm2, %v915_v26, 0.0 }
 0x2d6   :  { %v1174_v29 = vpop.xlane.xlu1 %1173  ;;  %v1744_v1 = vpop.f32.mrf.mxu1  ;;  %v1369_v2 = vmax.f32 %v1363_v21, 0.0  ;;  %v1187_v4 = vsel %vm38_vm0, %v1115_v0, -inf  ;;  %v1151_v59 = vsel %vm38_vm0, %v1127_v40, 0.0  ;;  %v1224_v35 = vrot.slane %v1223_v46, 1 }
 0x2d7   :  { %v2219_v43 = vadd.f32 0.5, %v1174_v29  ;;  %v1320_v58 = vsel %vm1310_vm3, %v1319_v33, %v1315_v62  ;;  %v2222_v9 = vmax.f32 %v1187_v4, %v1190_v5  ;;  %v1118_v16 = vsel %vm2140_vm1, 0.0, %v1744_v1 }
 0x2d8   :  { %v1171_v10 = vpop.xlane.xlu0 %1170  ;;  %v1002_v47 = vpop.f32.mrf.mxu1  ;;  %v1384_v13 = vrot.slane %v1369_v2, %v2209_v60  ;;  %v1364_v14 = vsub.f32 %v1284_v34, %v1320_v58  ;;  %v1196_v30 = vsel %vm38_vm0, %v1118_v16, -inf  ;;  %v1130_v56 = vsel %vm2140_vm1, %v1744_v1, 0.0 }
 0x2d9   :  { %v1260_v22 = vsub.f32 %v2219_v43, %v2193_v31  ;;  %v2229_v23 = vadd.f32 0.5, %v1171_v10  ;;  %v1117_v24 = vsel %vm2145_vm2, 0.0, %v1002_v47  ;;  %v1129_v53 = vsel %vm2145_vm2, %v1002_v47, 0.0 }
 0x2da   :  { %v1180_v11 = vpop.xlane.xlu1 %1179  ;;  %1390 = vbcast.lane.b32.xlu1 %v1384_v13, 264  ;;  %1386 = vbcast.lane.b32.xlu0 %v1384_v13, 256  ;;  %v1370_v8 = vmax.f32 %v1364_v14, 0.0  ;;  %v1193_v27 = vsel %vm38_vm0, %v1117_v24, -inf  ;;  %v1157_v6 = vsel %vm38_vm0, %v1129_v53, 0.0  ;;  %v1751_v63 = vpop.f32.mrf.mxu0  ;;  %v1160_v44 = vsel %vm38_vm0, %v1130_v56, 0.0 }
 0x2db   :  { %v1259_v28 = vsub.f32 %v2229_v23, %v2195_v41  ;;  %v2236_v12 = vadd.f32 0.5, %v1180_v11  ;;  %v1233_v45 = vmax.f32 %v1193_v27, %v1196_v30  ;;  %v1132_v54 = vsel %vm2140_vm1, %v1751_v63, 0.0 }
 0x2dc   :  { %v1177_v3 = vpop.xlane.xlu0 %1176  ;;  %v1395_v32 = vrot.slane %v1370_v8, %v2209_v60  ;;  %v1089_v15 = vpop.f32.mrf.mxu0  ;;  %v1225_v26 = vmax.f32 %v1223_v46, %v1224_v35  ;;  %v1166_v33 = vsel %vm38_vm0, %v1132_v54, 0.0  ;;  %v1880_v34 = vmov 0  }
 0x2dd   :  { %v1262_v36 = vsub.f32 %v2236_v12, %v2201_v48  ;;  %v2242_v38 = vadd.f32 0.5, %v1177_v3  ;;  %v1131_v7 = vsel %vm2145_vm2, %v1089_v15, 0.0  ;;  %1760 = vset.pattern.permute.xlu1 %v1880_v34  ;;  %1759 = vset.pattern.permute.xlu0 %v1880_v34  ;;  %v1120_v58 = vsel %vm2140_vm1, 0.0, %v1751_v63 }
 0x2de   :  { %1397 = vbcast.lane.b32.xlu1 %v1395_v32, 256  ;;  %v1163_v49 = vsel %vm38_vm0, %v1131_v7, 0.0  ;;  %v2265_v51 = vpop.xlane.xlu1 %1149  ;;  %v1285_v0 = vadd.f32 0.5, %v1225_v26  ;;  %v1202_v10 = vsel %vm38_vm0, %v1120_v58, -inf  ;;  %v1227_v47 = vrot.slane %v2222_v9, 4 }
 0x2df   :  { %v1261_v39 = vsub.f32 %v2242_v38, %v2206_v55  ;;  %v1328_v21 = vrot.slane %v2265_v51, %v2191_v18  ;;  %v1234_v14 = vrot.slane %v1233_v45, 4  ;;  %v1274_v31 = vmax.f32 %v1262_v36, 0.0 }
 0x2e0   :  { %v2263_v50 = vpop.xlane.xlu0 %1146  ;;  %v1228_v13 = vmax.f32 %v2222_v9, %v1227_v47 }
 0x2e1   :  { %v1324_v52 = vrot.slane %v2263_v50, %v2188_v17  ;;  %v1235_v11 = vmax.f32 %v1233_v45, %v1234_v14 }
 0x2e2   :  { %v2284_v24 = vpop.xlane.xlu1 %1185  ;;  %v1229_v20 = vrot.slane %v1228_v13, 2 }
 0x2e3   :  { %v1329_v62 = vsel %vm1310_vm3, %v1328_v21, %v1324_v52  ;;  %v1252_v48 = vadd.f32 0.5, %v2284_v24 }
 0x2e4   :  { %v1365_v29 = vsub.f32 %v1285_v0, %v1329_v62  ;;  %v1183_v16 = vpop.xlane.xlu0 %1182 }
 0x2e5   :  { %v1264_v12 = vsub.f32 %v1252_v48, %v2265_v51 }
 0x2e6   :  { %v1371_v1 = vmax.f32 %v1365_v29, 0.0 }
 0x2e8   :  { %v1406_v2 = vrot.slane %v1371_v1, %v2209_v60 }
 0x2f9   :  { %1152 = vadd.xlane.f32.xlu0 %v1151_v59 }
 0x2fd   :  { %1158 = vadd.xlane.f32.xlu0 %v1157_v6 }
 0x301   :  { %1188 = vmax.xlane.f32.xlu0 %v1187_v4  ;;  %v1119_v4 = vsel %vm2145_vm2, 0.0, %v1089_v15 }
 0x302   :  { %1155 = vadd.xlane.f32.xlu1 %v1154_v61 }
 0x305   :  { %1194 = vmax.xlane.f32.xlu0 %v1193_v27  ;;  %v1230_v27 = vmax.f32 %v1228_v13, %v1229_v20 }
 0x306   :  { %1161 = vadd.xlane.f32.xlu1 %v1160_v44 }
 0x307   :  { %v1231_v40 = vrot.slane %v1230_v27, 1 }
 0x309   :  { %1164 = vadd.xlane.f32.xlu0 %v1163_v49  ;;  %v1232_v57 = vmax.f32 %v1230_v27, %v1231_v40 }
 0x30a   :  { %1191 = vmax.xlane.f32.xlu1 %v1190_v5  ;;  %v1199_v5 = vsel %vm38_vm0, %v1119_v4, -inf }
 0x30b   :  { %v1240_v25 = vmax.f32 %v1199_v5, %v1202_v10  ;;  %v1286_v44 = vadd.f32 0.5, %v1232_v57 }
 0x30d   :  { %v1241_v53 = vrot.slane %v1240_v25, 4 }
 0x30e   :  { %1197 = vmax.xlane.f32.xlu1 %v1196_v30  ;;  %v1236_v30 = vrot.slane %v1235_v11, 2 }
 0x30f   :  { %v1242_v63 = vmax.f32 %v1240_v25, %v1241_v53 }
 0x310   :  { %v1237_v59 = vmax.f32 %v1235_v11, %v1236_v30 }
 0x311   :  { %v1243_v42 = vrot.slane %v1242_v63, 2 }
 0x312   :  { %1167 = vadd.xlane.f32.xlu1 %v1166_v33  ;;  %v1238_v6 = vrot.slane %v1237_v59, 1 }
 0x313   :  { %v1244_v62 = vmax.f32 %v1242_v63, %v1243_v42 }
 0x314   :  { %v1239_v46 = vmax.f32 %v1237_v59, %v1238_v6 }
 0x316   :  { %v1287_v1 = vadd.f32 0.5, %v1239_v46 }
 0x31f   :  { %1408 = vbcast.lane.b32.xlu0 %v1406_v2, 256 }
 0x323   :  { %1401 = vbcast.lane.b32.xlu1 %v1395_v32, 264 }
 0x33e   :  { %1200 = vmax.xlane.f32.xlu0 %v1199_v5 }
 0x347   :  { %1203 = vmax.xlane.f32.xlu1 %v1202_v10  ;;  %v1245_v10 = vrot.slane %v1244_v62, 1 }
 0x349   :  { %v1246_v30 = vmax.f32 %v1244_v62, %v1245_v10 }
 0x34b   :  { %v1288_v6 = vadd.f32 0.5, %v1246_v30 }
 0x34c   :  { %v2286_v8 = vpop.permute.xlu0 %1386  ;;  %v1391_v3 = vpop.permute.xlu1 %1390 }
 0x350   :  { %v2292_v9 = vpop.permute.xlu1 %1397 }
 0x358   :  { %1412 = vbcast.lane.b32.xlu1 %v1406_v2, 264 }
 0x382   :  { %v2288_v32 = vpop.xlane.xlu0 %1152 }
 0x383   :  { %v1333_v15 = vrot.slane %v2288_v32, %v2188_v17 }
 0x386   :  { %v2290_v37 = vpop.xlane.xlu0 %1158 }
 0x387   :  { %v1342_v21 = vrot.slane %v2290_v37, %v2188_v17 }
 0x38a   :  { %v1189_v19 = vpop.xlane.xlu0 %1188 }
 0x38b   :  { %v2294_v45 = vadd.f32 0.5, %v1189_v19  ;;  %v2296_v61 = vpop.xlane.xlu1 %1155  ;;  %v1251_v19 = vadd.f32 0.5, %v1183_v16  ;;  %v1273_v16 = vmax.f32 %v1261_v39, 0.0 }
 0x38c   :  { %v1337_v56 = vrot.slane %v2296_v61, %v2191_v18 }
 0x38d   :  { %v1265_v7 = vsub.f32 %v2294_v45, %v2288_v32 }
 0x38e   :  { %v1195_v49 = vpop.xlane.xlu0 %1194  ;;  %v1338_v35 = vsel %vm1310_vm3, %v1337_v56, %v1333_v15  ;;  %v1271_v15 = vmax.f32 %v1259_v28, 0.0 }
 0x38f   :  { %v2305_v52 = vadd.f32 0.5, %v1195_v49  ;;  %v2307_v54 = vpop.xlane.xlu1 %1161  ;;  %v1366_v26 = vsub.f32 %v1286_v44, %v1338_v35  ;;  %v1263_v35 = vsub.f32 %v1251_v19, %v2263_v50 }
 0x390   :  { %v1346_v33 = vrot.slane %v2307_v54, %v2191_v18  ;;  %v1459_v44 = vadd.f32 %v2286_v8, %v1271_v15 }
 0x391   :  { %v1267_v0 = vsub.f32 %v2305_v52, %v2290_v37  ;;  %v1372_v29 = vmax.f32 %v1366_v26, 0.0 }
 0x392   :  { %v1347_v2 = vsel %vm1310_vm3, %v1346_v33, %v1342_v21  ;;  %v2319_v27 = vpop.xlane.xlu0 %1164  ;;  %v1471_v43 = vmul.f32 0.010416667, %v1459_v44 }
 0x393   :  { %v1192_v34 = vpop.xlane.xlu1 %1191  ;;  %v1417_v4 = vrot.slane %v1372_v29, %v2209_v60  ;;  %v1367_v5 = vsub.f32 %v1287_v1, %v1347_v2  ;;  %v1351_v59 = vrot.slane %v2319_v27, %v2188_v17  ;;  %v1277_v29 = vmax.f32 %v1265_v7, 0.0 }
 0x394   :  { %v1254_v58 = vadd.f32 0.5, %v1192_v34 }
 0x395   :  { %1423 = vbcast.lane.b32.xlu1 %v1417_v4, 264  ;;  %1419 = vbcast.lane.b32.xlu0 %v1417_v4, 256  ;;  %v1373_v47 = vmax.f32 %v1367_v5, 0.0 }
 0x396   :  { %v1266_v13 = vsub.f32 %v1254_v58, %v2296_v61  ;;  %v1272_v61 = vmax.f32 %v1260_v22, 0.0  ;;  %v1461_v22 = vadd.f32 %v2292_v9, %v1273_v16  ;;  %v1409_v28 = vpop.permute.xlu0 %1408  ;;  %v1276_v9 = vmax.f32 %v1264_v12, 0.0 }
 0x397   :  { %v1198_v14 = vpop.xlane.xlu1 %1197  ;;  %v1428_v20 = vrot.slane %v1373_v47, %v2209_v60  ;;  %v1279_v58 = vmax.f32 %v1267_v0, 0.0 }
 0x398   :  { %v1256_v11 = vadd.f32 0.5, %v1198_v14  ;;  %v1460_v42 = vadd.f32 %v1391_v3, %v1272_v61  ;;  %v1473_v50 = vmul.f32 0.010416667, %v1461_v22  ;;  %v1278_v62 = vmax.f32 %v1266_v13, 0.0 }
 0x399   :  { %1434 = vbcast.lane.b32.xlu1 %v1428_v20, 264  ;;  %1430 = vbcast.lane.b32.xlu0 %v1428_v20, 256 }
 0x39a   :  { %v1268_v25 = vsub.f32 %v1256_v11, %v2307_v54  ;;  %v1472_v41 = vmul.f32 0.010416667, %v1460_v42 }
 0x39b   :  { %v2322_v40 = vpop.xlane.xlu1 %1167 }
 0x39c   :  { %v1355_v53 = vrot.slane %v2322_v40, %v2191_v18  ;;  %v1280_v5 = vmax.f32 %v1268_v25, 0.0 }
 0x39e   :  { %v1356_v63 = vsel %vm1310_vm3, %v1355_v53, %v1351_v59 }
 0x39f   :  { %v1368_v57 = vsub.f32 %v1288_v6, %v1356_v63  ;;  %v1402_v49 = vpop.permute.xlu1 %1401 }
 0x3a0   :  { %v1462_v23 = vadd.f32 %v1402_v49, %v1274_v31 }
 0x3a1   :  { %v1374_v56 = vmax.f32 %v1368_v57, 0.0 }
 0x3a2   :  { %v1474_v3 = vmul.f32 0.010416667, %v1462_v23 }
 0x3a3   :  { %v1439_v46 = vrot.slane %v1374_v56, %v2209_v60  ;;  %v1275_v60 = vmax.f32 %v1263_v35, 0.0 }
 0x3a5   :  { %1445 = vbcast.lane.b32.xlu1 %v1439_v46, 264  ;;  %1441 = vbcast.lane.b32.xlu0 %v1439_v46, 256  ;;  %v1463_v8 = vadd.f32 %v1409_v28, %v1275_v60 }
 0x3a7   :  { %v1475_v55 = vmul.f32 0.010416667, %v1463_v8 }
 0x3a9   :  { %1499 = vperm.xlu1 %1760, %v1472_v41   ;;  %1496 = vperm.xlu0 %1759, %v1471_v43  }
 0x3ad   :  { %1502 = vperm.xlu1 %1760, %v1473_v50   ;;  %1505 = vperm.xlu0 %1759, %v1474_v3  }
 0x3b1   :  { %1508 = vperm.xlu1 %1760, %v1475_v55  }
 0x3c7   :  { %v1201_v33 = vpop.xlane.xlu0 %1200 }
 0x3c8   :  { %v1257_v13 = vadd.f32 0.5, %v1201_v33 }
 0x3ca   :  { %v1269_v7 = vsub.f32 %v1257_v13, %v2319_v27 }
 0x3cc   :  { %v1281_v30 = vmax.f32 %v1269_v7, 0.0 }
 0x3d0   :  { %v1204_v36 = vpop.xlane.xlu1 %1203 }
 0x3d1   :  { %v1258_v38 = vadd.f32 0.5, %v1204_v36 }
 0x3d3   :  { %v1270_v39 = vsub.f32 %v1258_v38, %v2322_v40 }
 0x3d4   :  { %v1413_v54 = vpop.permute.xlu1 %1412 }
 0x3d5   :  { %v1464_v26 = vadd.f32 %v1413_v54, %v1276_v9  ;;  %v1282_v11 = vmax.f32 %v1270_v39, 0.0 }
 0x3d7   :  { %v1476_v21 = vmul.f32 0.010416667, %v1464_v26 }
 0x3d9   :  { %1511 = vperm.xlu0 %1759, %v1476_v21  }
 0x407   :  { %v1424_v1 = vpop.permute.xlu1 %1423  ;;  %v1420_v2 = vpop.permute.xlu0 %1419 }
 0x408   :  { %v1466_v24 = vadd.f32 %v1424_v1, %v1278_v62  ;;  %v1465_v34 = vadd.f32 %v1420_v2, %v1277_v29 }
 0x40a   :  { %v1478_v51 = vmul.f32 0.010416667, %v1466_v24  ;;  %v1477_v4 = vmul.f32 0.010416667, %v1465_v34 }
 0x40b   :  { %v1435_v10 = vpop.permute.xlu1 %1434  ;;  %v1431_v47 = vpop.permute.xlu0 %1430 }
 0x40c   :  { %v1468_v14 = vadd.f32 %v1435_v10, %v1280_v5  ;;  %v1467_v20 = vadd.f32 %v1431_v47, %v1279_v58  ;;  %1514 = vperm.xlu1 %1760, %v1477_v4   ;;  %1517 = vperm.xlu0 %1759, %v1478_v51  }
 0x40e   :  { %v1480_v32 = vmul.f32 0.010416667, %v1468_v14  ;;  %v1479_v45 = vmul.f32 0.010416667, %v1467_v20 }
 0x410   :  { %1523 = vperm.xlu0 %1759, %v1480_v32   ;;  %1520 = vperm.xlu1 %1760, %v1479_v45  }
 0x417   :  { %v1446_v25 = vpop.permute.xlu1 %1445  ;;  %v1442_v40 = vpop.permute.xlu0 %1441 }
 0x418   :  { %v1470_v59 = vadd.f32 %v1446_v25, %v1282_v11  ;;  %v1469_v37 = vadd.f32 %v1442_v40, %v1281_v30 }
 0x41a   :  { %v1482_v52 = vmul.f32 0.010416667, %v1470_v59  ;;  %v1481_v0 = vmul.f32 0.010416667, %v1469_v37 }
 0x41c   :  { %1529 = vperm.xlu0 %1759, %v1482_v52   ;;  %1526 = vperm.xlu1 %1760, %v1481_v0  }
 0x424   :  { %v1500_v53 = vpop.permute.xlu1 %1499  ;;  %v1497_v6 = vpop.permute.xlu0 %1496 }
 0x425   :  { %v1538_v35 = vrot.slane %v1500_v53, %v2191_v18  ;;  %v1534_v16 = vrot.slane %v1497_v6, %v2188_v17 }
 0x427   :  { %v1539_v50 = vsel %vm1310_vm3, %v1538_v35, %v1534_v16 }
 0x428   :  { %v1503_v63 = vpop.permute.xlu1 %1502  ;;  %v1506_v57 = vpop.permute.xlu0 %1505 }
 0x429   :  { %v1543_v27 = vrot.slane %v1503_v63, %v2188_v17  ;;  %v1547_v42 = vrot.slane %v1506_v57, %v2191_v18 }
 0x42b   :  { %v1548_v28 = vsel %vm1310_vm3, %v1547_v42, %v1543_v27 }
 0x42c   :  { %v1509_v19 = vpop.permute.xlu1 %1508  ;;  %v1586_v3 = vsel %vm1585_vm4, %v1548_v28, %v1539_v50 }
 0x42d   :  { %v1552_v43 = vrot.slane %v1509_v19, %v2188_v17 }
 0x454   :  { %v1512_v61 = vpop.permute.xlu0 %1511 }
 0x455   :  { %v1556_v49 = vrot.slane %v1512_v61, %v2191_v18 }
 0x457   :  { %v1557_v60 = vsel %vm1310_vm3, %v1556_v49, %v1552_v43 }
 0x458   :  { %v1588_v36 = vsel %vm1587_vm5, %v1557_v60, %v1586_v3 }
 0x487   :  { %v1515_v15 = vpop.permute.xlu1 %1514  ;;  %v1518_v56 = vpop.permute.xlu0 %1517 }
 0x488   :  { %v1561_v31 = vrot.slane %v1515_v15, %v2188_v17  ;;  %v1565_v41 = vrot.slane %v1518_v56, %v2191_v18 }
 0x48a   :  { %v1566_v8 = vsel %vm1310_vm3, %v1565_v41, %v1561_v31 }
 0x48b   :  { %v1521_v44 = vpop.permute.xlu1 %1520  ;;  %v1524_v46 = vpop.permute.xlu0 %1523  ;;  %v1590_v9 = vsel %vm1589_vm6, %v1566_v8, %v1588_v36 }
 0x48c   :  { %v1570_v22 = vrot.slane %v1521_v44, %v2188_v17  ;;  %v1574_v23 = vrot.slane %v1524_v46, %v2191_v18 }
 0x48e   :  { %v1575_v55 = vsel %vm1310_vm3, %v1574_v23, %v1570_v22 }
 0x48f   :  { %v1592_v26 = vsel %vm1591_vm7, %v1575_v55, %v1590_v9 }
 0x497   :  { %v1527_v48 = vpop.permute.xlu1 %1526  ;;  %v1530_v12 = vpop.permute.xlu0 %1529 }
 0x498   :  { %v1579_v38 = vrot.slane %v1527_v48, %v2188_v17  ;;  %v1583_v39 = vrot.slane %v1530_v12, %v2191_v18 }
 0x49a   :  { %v1584_v54 = vsel %vm1310_vm3, %v1583_v39, %v1579_v38 }
 0x49b   :  { %v1594_v21 = vsel %vm1593_vm8, %v1584_v54, %v1592_v26 }
 0x49c   :  { %v1597_v33 = vsel %vm1596_vm9, %v1594_v21, 0.0 }
 0x49d   :  { %1598 = vadd.xlane.f32.xlu1 %v1597_v33 }
 0x526   :  { %v1599_v62 = vpop.xlane.xlu1 %1598 }
 0x527   :  { %v1600_v29 = vrot.slane %v1599_v62, 4 }
 0x529   :  { %v1601_v1 = vadd.f32 %v1600_v29, %v1599_v62 }
 0x52b   :  { %v1602_v2 = vrot.slane %v1601_v1, 2 }
 0x52d   :  { %v1603_v24 = vadd.f32 %v1602_v2, %v1601_v1 }
 0x52f   :  { %v1604_v34 = vrot.slane %v1603_v24, 1 }
 0x531   :  { %v1605_v51 = vadd.f32 %v1604_v34, %v1603_v24 }
 0x533   :  { %1752 = vpush %v1605_v51 }
 0x564   :  { %s1753_s0 = spop %1752 }
 0x565   :  { %1608 = sst [smem:[#allocation5]] %s1753_s0 }
 0x566   :  { %1616 = dma.smem_to_hbm %s1881_s13, 16, %s2377_s1, [#allocation4]  }
 0x567   :  { %1875 = dma.done.wait [#allocation4], 16  }
 0x568   :  { %1876 = vsyncadd [#allocation4], 4294967280 }
 0x569   :  { %1620 = sfence }
 0x56a   :  { %1621 = vsyncpa [#allocation3], 1 }
 0x56b   :  { %1622 = vsyncpa [#allocation4], 1 }

</bundles_post_ra>
